<compile_context>
chip_gen: v7x
topology: tpu7x:2x2x1
jax: 0.10.0
libtpu: 0.0.40
codegen_flags: <defaults>
</compile_context>

<pallas_src>
import math

import jax
import jax.numpy as jnp
from jax import lax
from jax.experimental import pallas as pl
from jax.experimental.pallas import tpu as pltpu

LOG_2PI = math.log(2.0 * math.pi)


def _round_up(x, m):
    return ((x + m - 1) // m) * m


def _cdiv(a, b):
    return (a + b - 1) // b


def _gmm_neg_logprob_kernel(z_ref, means_ref, out_ref):
    # z tile : [TN, D]  (batch on sublanes, features on lanes), native dtype
    # means  : [K,  D]  (constant block, resident across the grid)
    # out    : [1, 1, TN] lane-dense row of -log p(z) under the standard GMM
    z = z_ref[...]
    mu = means_ref[...]

    d = z.shape[-1]
    k = mu.shape[0]

    # cross_t[k, n] = mu_k . z_n — contract the last dim of BOTH operands so no
    # transpose is materialized.  Inputs go to the MXU in their native dtype
    # (bf16 stays one MXU pass); accumulation is f32.
    mu_mm = mu if mu.dtype == z.dtype else mu.astype(z.dtype)
    cross_t = lax.dot_general(
        mu_mm, z, (((1,), (1,)), ((), ())),
        preferred_element_type=jnp.float32)                 # [K, TN]

    # ||z_n||^2 as a lane-dense [1, TN] row via a ones-matvec on the otherwise
    # idle MXU.  Only this path upcasts z to f32 (needed for the square).
    zf = z.astype(jnp.float32)
    z2 = zf * zf
    z_sq_row = lax.dot_general(
        jnp.ones((1, d), jnp.float32), z2, (((1,), (1,)), ((), ())),
        preferred_element_type=jnp.float32)                 # [1, TN]

    # Fold all per-component constants into one [K, 1] bias:
    #   -0.5*||mu_k||^2 - 0.5*D*log(2*pi) - log(K)
    muf = mu.astype(jnp.float32)
    bias_col = (-0.5) * jnp.sum(muf * muf, axis=-1, keepdims=True) \
        + (-0.5 * d * LOG_2PI - math.log(k))                # [K, 1]

    log_comp = cross_t - 0.5 * z_sq_row + bias_col          # [K, TN]

    # Numerically stable logsumexp over the K components (sublane axis, XLU).
    m = jnp.max(log_comp, axis=0, keepdims=True)            # [1, TN]
    lse = m + jnp.log(jnp.sum(jnp.exp(log_comp - m), axis=0, keepdims=True))

    out_ref[0] = -lse                                       # dense (1, TN) store


def _vmem_capacity_bytes():
    try:
        return int(pltpu.get_tpu_info().vmem_capacity_bytes)
    except Exception:
        # Unknown -> assume the smallest generation (v7x: 64 MiB per core).
        return 64 * 1024 * 1024


def _choose_tiling(n, d, k, itemsize):
    """Pick (tile_rows, vmem_limit_bytes) from HBM-traffic and VMEM budgets."""
    d_pad = _round_up(d, 128)              # D < 128 occupies a full 128-lane row
    k_pad = max(_round_up(k, 8), 8)

    vmem_cap = _vmem_capacity_bytes()
    if vmem_cap >= 128 * 1024 * 1024:      # v5e / v6e (128 MiB physical VMEM)
        vmem_budget = 48 * 1024 * 1024
        vmem_limit = 64 * 1024 * 1024
    else:                                  # v7x (64 MiB physical / 32 MiB scoped)
        vmem_budget = 24 * 1024 * 1024
        vmem_limit = 32 * 1024 * 1024

    # Conservative VMEM bytes per batch row (lane padding folded in):
    #   up to 3 pipelined copies of the z input tile
    #   + f32 upcast of z (only when input is sub-32-bit) + z*z
    #   + ~4 [K, TN] f32 intermediates + double-buffered f32 output row.
    per_row = (3 * d_pad * itemsize
               + (d_pad * 4 if itemsize < 4 else 0)
               + d_pad * 4
               + 4 * k_pad * 4
               + 2 * 4)
    tile_vmem = max(128, (vmem_budget // per_row) // 128 * 128)

    # >= ~2 MiB of real HBM traffic of z per grid step so the ~0.35us per-step
    # pipeline overhead is well amortized.
    target_hbm_bytes = 2 * 1024 * 1024
    tile_hbm = _round_up(_cdiv(target_hbm_bytes, d * itemsize), 128)

    tile = min(tile_vmem, tile_hbm)

    # Ensure >= 2 grid steps for big batches so both v7x TensorCores get work
    # under dimension_semantics=("parallel",).
    if n >= 4 * 128:
        tile = min(tile, _round_up(_cdiv(n, 2), 128))

    # Never use a tile larger than the (sublane-rounded) batch itself.
    tile = min(tile, max(_round_up(n, 8), 8))
    return tile, vmem_limit


def transformed_gmm_loss(z, log_det, means, reduction="mean"):
    """Pallas implementation of TransformedGmmLoss.forward(z, log_det)."""
    n, d = z.shape
    k = means.shape[0]
    itemsize = jnp.dtype(z.dtype).itemsize

    tile, vmem_limit = _choose_tiling(n, d, k, itemsize)
    # Ragged last block: Pallas pads it; padded lanes are sliced off below and
    # never enter the reduction (each output lane depends only on its own row).
    num_tiles = _cdiv(n, tile)

    z_spec = pl.BlockSpec((tile, d), lambda i: (i, 0))
    if num_tiles >= 4:
        # Deeper input pipelining helps once per-step compute is tiny and HBM
        # is fast (v7x); guarded so older APIs fall back to double buffering.
        try:
            z_spec = pl.BlockSpec((tile, d), lambda i: (i, 0),
                                  pipeline_mode=pl.Buffered(3))
        except (AttributeError, TypeError):
            z_spec = pl.BlockSpec((tile, d), lambda i: (i, 0))

    neg_lse = pl.pallas_call(
        _gmm_neg_logprob_kernel,
        out_shape=jax.ShapeDtypeStruct((num_tiles, 1, tile), jnp.float32),
        grid=(num_tiles,),
        in_specs=[
            z_spec,                                      # z batch tile
            pl.BlockSpec((k, d), lambda i: (0, 0)),      # means, resident
        ],
        out_specs=pl.BlockSpec((1, 1, tile), lambda i: (i, 0, 0)),
        compiler_params=pltpu.CompilerParams(
            # Batch axis is embarrassingly parallel -> shards across v7x's 2 TCs.
            dimension_semantics=("parallel",),
            vmem_limit_bytes=vmem_limit,
        ),
    )(z, means)

    neg_lse = neg_lse.reshape(num_tiles * tile)[:n]
    # log_det stays outside the kernel; this subtract and the reduction fuse
    # into one small XLA op over the lane-dense kernel output.
    nll = neg_lse - log_det.astype(jnp.float32)
    if reduction == "mean":
        return jnp.mean(nll)
    if reduction == "sum":
        return jnp.sum(nll)
    return nll


def _reference_loss(z, log_det, means, reduction="mean"):
    """Pure-JAX reference mirroring pyblaze semantics."""
    n, d = z.shape
    k = means.shape[0]
    diff = z[:, None, :].astype(jnp.float32) - means[None, :, :].astype(jnp.float32)
    d2 = jnp.sum(diff * diff, axis=-1)
    log_comp = -0.5 * (d * LOG_2PI + d2) - math.log(k)
    log_prob = jax.scipy.special.logsumexp(log_comp, axis=-1)
    nll = -log_prob - log_det
    if reduction == "mean":
        return jnp.mean(nll)
    if reduction == "sum":
        return jnp.sum(nll)
    return nll


if __name__ == "__main__":
    # Small, module-consistent shapes: batch N=16, dimensionality D=32, K=4 components.
    N, D, K = 16, 32, 4

    key = jax.random.PRNGKey(0)
    k_z, k_ld, k_mu = jax.random.split(key, 3)

    z = jax.random.normal(k_z, (N, D), dtype=jnp.float32)
    log_det = jax.random.normal(k_ld, (N,), dtype=jnp.float32)
    means = jax.random.normal(k_mu, (K, D), dtype=jnp.float32) * 2.0

    loss = transformed_gmm_loss(z, log_det, means, reduction="mean")
    loss = jax.block_until_ready(loss)

    ref = _reference_loss(z, log_det, means, reduction="mean")
    assert jnp.allclose(loss, ref, rtol=1e-5, atol=1e-5), (loss, ref)

    # Also sanity-check the un-reduced path once.
    nll = jax.block_until_ready(transformed_gmm_loss(z, log_det, means, reduction="none"))
    nll_ref = _reference_loss(z, log_det, means, reduction="none")
    assert jnp.allclose(nll, nll_ref, rtol=1e-5, atol=1e-5)

    print("KERNEL_OK")
</pallas_src>

<mosaic_0001>
module attributes {stable_mosaic.version = 11 : i64} {
  func.func @_gmm_neg_logprob_kernel(%arg0: i32, %arg1: memref<16x32xf32, #tpu.memory_space<vmem>>, %arg2: memref<4x32xf32, #tpu.memory_space<vmem>>, %arg3: memref<1x1x16xf32, #tpu.memory_space<vmem>>) attributes {dimension_semantics = [#tpu.dimension_semantics<parallel>], iteration_bounds = array<i64: 1>, scalar_prefetch = 0 : i64, scratch_operands = 0 : i64, tpu.core_type = #tpu.core_type<tc>, window_params = [{transform_indices = @transform_0, window_bounds = array<i64: 16, 32>}, {pipeline_mode = #tpu.pipeline_mode<synchronous>, transform_indices = @transform_1, window_bounds = array<i64: 4, 32>}, {transform_indices = @transform_2, window_bounds = array<i64: 1, 1, 16>}]} {
    %c0 = arith.constant 0 : index
    %c0_0 = arith.constant 0 : index
    %0 = vector.load %arg1[%c0, %c0_0] : memref<16x32xf32, #tpu.memory_space<vmem>>, vector<16x32xf32>
    %c0_1 = arith.constant 0 : index
    %c0_2 = arith.constant 0 : index
    %1 = vector.load %arg2[%c0_1, %c0_2] : memref<4x32xf32, #tpu.memory_space<vmem>>, vector<4x32xf32>
    %cst = arith.constant dense<0.000000e+00> : vector<4x16xf32>
    %2 = tpu.matmul %1, %0, %cst {dimension_numbers = #tpu.dot_dimension_numbers<[1], [1], [0], [0], [0, 0, 1, 0], [], []>} : vector<4x32xf32>, vector<16x32xf32>, vector<4x16xf32> -> vector<4x16xf32>
    %3 = arith.mulf %0, %0 : vector<16x32xf32>
    %cst_3 = arith.constant 1.000000e+00 : f32
    %4 = vector.broadcast %cst_3 : f32 to vector<1x32xf32>
    %cst_4 = arith.constant dense<0.000000e+00> : vector<1x16xf32>
    %5 = tpu.matmul %4, %3, %cst_4 {dimension_numbers = #tpu.dot_dimension_numbers<[1], [1], [0], [0], [0, 0, 1, 0], [], []>} : vector<1x32xf32>, vector<16x32xf32>, vector<1x16xf32> -> vector<1x16xf32>
    %6 = arith.mulf %1, %1 : vector<4x32xf32>
    %cst_5 = arith.constant dense<0.000000e+00> : vector<4xf32>
    %7 = vector.multi_reduction <add>, %6, %cst_5 [1] : vector<4x32xf32> to vector<4xf32>
    %8 = vector.shape_cast %7 : vector<4xf32> to vector<4x1xf32>
    %cst_6 = arith.constant -5.000000e-01 : f32
    %9 = vector.broadcast %cst_6 : f32 to vector<4x1xf32>
    %10 = arith.mulf %9, %8 : vector<4x1xf32>
    %cst_7 = arith.constant -30.7923279 : f32
    %11 = vector.broadcast %cst_7 : f32 to vector<4x1xf32>
    %12 = arith.addf %10, %11 : vector<4x1xf32>
    %cst_8 = arith.constant 5.000000e-01 : f32
    %13 = vector.broadcast %cst_8 : f32 to vector<1x16xf32>
    %14 = arith.mulf %13, %5 : vector<1x16xf32>
    %15 = vector.broadcast %14 : vector<1x16xf32> to vector<4x16xf32>
    %16 = arith.subf %2, %15 : vector<4x16xf32>
    %17 = vector.broadcast %12 : vector<4x1xf32> to vector<4x16xf32>
    %18 = arith.addf %16, %17 : vector<4x16xf32>
    %cst_9 = arith.constant dense<0xFF800000> : vector<16xf32>
    %19 = vector.multi_reduction <maximumf>, %18, %cst_9 [0] : vector<4x16xf32> to vector<16xf32>
    %20 = vector.shape_cast %19 : vector<16xf32> to vector<1x16xf32>
    %21 = vector.broadcast %20 : vector<1x16xf32> to vector<4x16xf32>
    %22 = arith.subf %18, %21 : vector<4x16xf32>
    %23 = math.exp %22 : vector<4x16xf32>
    %cst_10 = arith.constant dense<0.000000e+00> : vector<16xf32>
    %24 = vector.multi_reduction <add>, %23, %cst_10 [0] : vector<4x16xf32> to vector<16xf32>
    %25 = vector.shape_cast %24 : vector<16xf32> to vector<1x16xf32>
    %26 = math.log %25 : vector<1x16xf32>
    %27 = arith.addf %20, %26 : vector<1x16xf32>
    %cst_11 = arith.constant 0.000000e+00 : f32
    %28 = vector.broadcast %cst_11 : f32 to vector<1x16xf32>
    %29 = arith.subf %28, %27 : vector<1x16xf32>
    %c0_12 = arith.constant 0 : index
    %c0_13 = arith.constant 0 : index
    %c0_14 = arith.constant 0 : index
    %30 = vector.load %arg3[%c0_12, %c0_13, %c0_14] : memref<1x1x16xf32, #tpu.memory_space<vmem>>, vector<1x1x16xf32>
    %31 = vector.shape_cast %30 : vector<1x1x16xf32> to vector<1x16xf32>
    %32 = vector.shape_cast %29 : vector<1x16xf32> to vector<1x1x16xf32>
    tpu.vector_store %arg3[%c0_12, %c0_13, %c0_14], %32 {strides = array<i32>} : memref<1x1x16xf32, #tpu.memory_space<vmem>>, vector<1x1x16xf32>,
    return
  }
  func.func @transform_0(%arg0: i32) -> (i32, i32) {
    %c0_i32 = arith.constant 0 : i32
    %c0_i32_0 = arith.constant 0 : i32
    return %arg0, %c0_i32 : i32, i32
  }
  func.func @transform_1(%arg0: i32) -> (i32, i32) {
    %c0_i32 = arith.constant 0 : i32
    %c0_i32_0 = arith.constant 0 : i32
    %c0_i32_1 = arith.constant 0 : i32
    return %c0_i32, %c0_i32_0 : i32, i32
  }
  func.func @transform_2(%arg0: i32) -> (i32, i32, i32) {
    %c0_i32 = arith.constant 0 : i32
    %c0_i32_0 = arith.constant 0 : i32
    %c0_i32_1 = arith.constant 0 : i32
    return %arg0, %c0_i32, %c0_i32_0 : i32, i32, i32
  }
}

</mosaic_0001>

<bundles_post_ra>
// kernel: tpu_custom_call.1
= control target key start
LH: loop header
LB: loop body
LE: loop exit
PB: predicated region body
PF: predicated region fallthrough
CT: control target
= control target key end

     0   :  { %7 = vsyncpa [#allocation3], 0  ;;  %s439_s0 = inlined_call_operand.hbm [shape: f32[16,32], index: 0, kind: input, shape index: {}]   ;;  %s440_s1 = inlined_call_operand.hbm [shape: f32[4,32], index: 1, kind: input, shape index: {}]   ;;  %s441_s2 = inlined_call_operand.hbm [shape: f32[1,1,16], index: 2, kind: output, shape index: {}]  }
   0x1   :  { %8 = vsyncpa [#allocation6], 0 }
   0x2   :  { %9 = vsyncpa [#allocation4], 0  ;;  %s375_s9 = smov [#allocation2]   ;;  %s303_s13 = scalar_lea.hbm %s439_s0, 256 }
   0x3   :  { %s15_s10 = sshll.u32 %s375_s9, 4  ;;  %p304_p0 = scmp.ne.s32.totalorder %s439_s0, %s303_s13  ;;  %s16_s10 = int_to_ptr.vmem [resolvable:$true] %s15_s10 }
   0x4   :  { %p307_p1 = scmp.lt.u32.totalorder %s303_s13, %s439_s0 }
   0x6   :  { %p309_p2 = pnand %p307_p1, %p304_p0 }
   0x8   :  { %312 = shalt.err (!%p309_p2)
}
   0x9   :  { %s313_s18 = scalar_lea.vmem %s16_s10, 256  ;;  %p318_p4 = scmp.lt.s32.totalorder %s16_s10, %s16_s10 }
   0xa   :  { %p314_p3 = scmp.ne.s32.totalorder %s16_s10, %s313_s18  ;;  %p319_p5 = scmp.lt.s32.totalorder %s313_s18, %s313_s18 }
   0xc   :  { %p320_p6 = por %p319_p5, %p318_p4 }
   0xe   :  { %p321_p7 = pnand %p320_p6, %p314_p3 }
  0x10   :  { %324 = shalt.err (!%p321_p7)
}
  0x11   :  { %s376_s19 = smov 128   ;;  %s377_s20 = smov 8  }
  0x12   :  { %21 = dma.hbm_to_vmem [thread:$0]  %s439_s0, 256, %s16_s10, [#allocation3], %s376_s19, %s376_s19, %s377_s20  }
  0x13   :  { %s378_s23 = smov [#allocation5]   ;;  %s325_s27 = scalar_lea.hbm %s440_s1, 64 }
  0x14   :  { %s28_s24 = sshll.u32 %s378_s23, 4  ;;  %p326_p8 = scmp.ne.s32.totalorder %s440_s1, %s325_s27  ;;  %s29_s24 = int_to_ptr.vmem [resolvable:$true] %s28_s24 }
  0x15   :  { %p329_p9 = scmp.lt.u32.totalorder %s325_s27, %s440_s1 }
  0x17   :  { %p331_p10 = pnand %p329_p9, %p326_p8 }
  0x19   :  { %334 = shalt.err (!%p331_p10)
}
  0x1a   :  { %s335_s4 = scalar_lea.vmem %s29_s24, 64  ;;  %p340_p12 = scmp.lt.s32.totalorder %s29_s24, %s29_s24 }
  0x1b   :  { %p336_p11 = scmp.ne.s32.totalorder %s29_s24, %s335_s4  ;;  %p341_p13 = scmp.lt.s32.totalorder %s335_s4, %s335_s4 }
  0x1d   :  { %p342_p0 = por %p341_p13, %p340_p12 }
  0x1f   :  { %p343_p1 = pnand %p342_p0, %p336_p11 }
  0x21   :  { %346 = shalt.err (!%p343_p1)
}
  0x22   :  { %31 = dma.hbm_to_vmem [thread:$0]  %s440_s1, 64, %s29_s24, [#allocation6]  }
  0x23   :  { %369 = dma.done.wait [#allocation3], 256  }
  0x24   :  { %370 = vsyncadd [#allocation3], 4294967040 }
  0x25   :  { %371 = dma.done.wait [#allocation6], 64  }
  0x26   :  { %372 = vsyncadd [#allocation6], 4294967232  ;;  %v379_v0 = vmov 0.0|0.0   ;;  %vm380_vm0 = vmmov 0   ;;  %v381_v1 = vmov 0.0   ;;  %vm41_vm1 = vcmask 261120  }
  0x27   :  { %286 = vmatprep.subr.bf16.mxu1 %v379_v0  ;;  %282 = vmatprep.subr.bf16.mxu0 %v379_v0  ;;  %v38_v2 = vld [vmem:[#allocation2] sm:$0xff]  ;;  %v39_v3 = vld [vmem:[#allocation2 + $0x8] sm:$0xff]  ;;  %v40_v4 = vld [vmem:[#allocation5] sm:$0xf]  ;;  %vm203_vm2 = vcmask 257024   ;;  %v382_v11 = vmov 1.0   ;;  %v210_v12 = vlaneseq }
  0x28   :  { %279 = vmatprep.mubr.msk.f32.mxu1 %vm380_vm0, %v381_v1  ;;  %272 = vmatprep.mubr.msk.f32.mxu0 %vm380_vm0, %v381_v1  ;;  %v121_v5 = vmul.f32 %v38_v2, %v38_v2  ;;  %v122_v6 = vmul.f32 %v39_v3, %v39_v3  ;;  %v283_v7 = vpack.c.bf16 %v39_v3, %v38_v2  ;;  %vm284_vm3 = vmpackc.low %vm41_vm1, %vm41_vm1  ;;  %vm216_vm4 = vcmask 125952   ;;  %s383_s1 = smov [#allocation7]  }
  0x29   :  { %v202_v8 = vmul.f32 %v40_v4, %v40_v4  ;;  %v211_v13 = vshrl.u32 %v210_v12, 7  ;;  %s246_s6 = sshll.u32 %s383_s1, 4  ;;  %vm238_vm5 = vcmask 122880   ;;  %s247_s6 = int_to_ptr.vmem [resolvable:$true] %s246_s6 }
  0x2a   :  { %v287_v9 = vpack.c.bf16 %v122_v6, %v121_v5  ;;  %285 = vmatpush3.bf16.xpose.msk.msra.mxu0 %vm284_vm3, %v283_v7  ;;  %s347_s7 = scalar_lea.vmem %s247_s6, 16  ;;  %s351_s8 = scalar_lea.vmem %s247_s6, 32 }
  0x2b   :  { %v204_v10 = vsel %vm203_vm2, %v202_v8, 0.0  ;;  %v212_v17 = vsub.s32 0, %v211_v13  ;;  %p348_p2 = scmp.ne.s32.totalorder %s247_s6, %s347_s7  ;;  %p352_p3 = scmp.lt.s32.totalorder %s247_s6, %s247_s6 }
  0x2c   :  { %205 = vadd.xlane.f32.xlu0 %v204_v10  ;;  %289 = vmatpush3.bf16.xpose.msk.msra.mxu1 %vm284_vm3, %v287_v9  ;;  %p353_p4 = scmp.lt.s32.totalorder %s351_s8, %s347_s7 }
  0x2e   :  { %p354_p5 = por %p353_p4, %p352_p3 }
  0x30   :  { %p355_p6 = pnand %p354_p5, %p348_p2 }
  0x31   :  { %273 = vmatmul.mubr.msk.f32.vlgmr.msra.gmra.mrb[0].mxu0 %vm41_vm1, %v40_v4 }
  0x33   :  { %280 = vmatmul.mubr.msk.f32.vlgmr.msra.gmra.mrb[0].mxu1 %vm41_vm1, %v382_v11 }
  0xb9   :  { %v206_v14 = vpop.xlane.xlu0 %205 }
  0xba   :  { %v207_v16 = vmul.f32 -0.5, %v206_v14 }
  0xbc   :  { %v208_v22 = vadd.f32 -30.792328, %v207_v16 }
 0x104   :  { %v117_v15 = vpop.f32.mrb[0].mxu0 }
 0x105   :  { %v274_v18 = vpop.f32.mrb[1].mxu0 }
 0x106   :  { %v198_v19 = vpop.f32.mrb[0].mxu1 }
 0x107   :  { %v209_v20 = vmul.f32 0.5, %v198_v19  ;;  %v281_v21 = vpop.f32.mrb[1].mxu1 }
 0x109   :  { %v213_v23 = vrot.slane %v209_v20, %v212_v17 }
 0x10b   :  { %v214_v24 = vsub.f32 %v117_v15, %v213_v23 }
 0x10d   :  { %v215_v25 = vadd.f32 %v214_v24, %v208_v22 }
 0x10f   :  { %v217_v26 = vsel %vm216_vm4, %v215_v25, -inf }
 0x110   :  { %v218_v27 = vrot.slane %v217_v26, 4 }
 0x112   :  { %v219_v28 = vmax.f32 %v217_v26, %v218_v27 }
 0x114   :  { %v220_v29 = vrot.slane %v219_v28, 2 }
 0x116   :  { %v221_v30 = vmax.f32 %v219_v28, %v220_v29 }
 0x118   :  { %v222_v31 = vrot.slane %v221_v30, 1 }
 0x11a   :  { %v223_v32 = vmax.f32 %v221_v30, %v222_v31 }
 0x11c   :  { %v224_v33 = vsub.f32 %v215_v25, %v223_v32 }
 0x11e   :  { %v225_v34 = vmul.f32 1.442695, %v224_v33 }
 0x120   :  { %299 = vpow2.f32 %v225_v34 }
 0x12a   :  { %v300_v35 = vpop.eup %299 }
 0x12b   :  { %v227_v36 = vsel %vm216_vm4, %v300_v35, 0.0 }
 0x12c   :  { %v228_v37 = vrot.slane %v227_v36, 4 }
 0x12e   :  { %v229_v38 = vadd.f32 %v228_v37, %v227_v36 }
 0x130   :  { %v230_v39 = vrot.slane %v229_v38, 2 }
 0x132   :  { %v231_v40 = vadd.f32 %v230_v39, %v229_v38 }
 0x134   :  { %v232_v41 = vrot.slane %v231_v40, 1 }
 0x136   :  { %v233_v42 = vadd.f32 %v232_v41, %v231_v40 }
 0x138   :  { %301 = vlog2.f32 %v233_v42 }
 0x142   :  { %v302_v43 = vpop.eup %301 }
 0x143   :  { %v235_v44 = vmul.f32 0.6931472, %v302_v43 }
 0x145   :  { %v236_v45 = vadd.f32 %v235_v44, %v223_v32 }
 0x147   :  { %v237_v46 = vsub.f32 0.0, %v236_v45 }
 0x149   :  { %239 = vst.msk [vmem:[#allocation7] sm:$0x1] %vm238_vm5, %v237_v46 }
 0x14a   :  { %358 = shalt.err (!%p355_p6)
}
 0x14b   :  { %s359_s11 = scalar_lea.hbm %s441_s2, 16 }
 0x14c   :  { %p360_p7 = scmp.ne.s32.totalorder %s441_s2, %s359_s11  ;;  %p363_p8 = scmp.lt.u32.totalorder %s359_s11, %s441_s2 }
 0x14e   :  { %p365_p9 = pnand %p363_p8, %p360_p7 }
 0x150   :  { %368 = shalt.err (!%p365_p9)
}
 0x151   :  { %249 = dma.vmem_to_hbm [thread:$0]  %s247_s6, 16, %s441_s2, [#allocation4]  }
 0x152   :  { %373 = dma.done.wait [#allocation4], 16  }
 0x153   :  { %374 = vsyncadd [#allocation4], 4294967280 }
 0x154   :  { %253 = vsyncpa [#allocation3], 1 }
 0x155   :  { %254 = vsyncpa [#allocation6], 1 }
 0x156   :  { %255 = vsyncpa [#allocation4], 1 }

</bundles_post_ra>
